<compile_context>
chip_gen: v5e
topology: v5e:2x2
jax: 0.10.0
libtpu: 0.0.40
codegen_flags: <defaults>
</compile_context>

<pallas_src>
import functools

import jax
import jax.numpy as jnp
from jax.experimental import pallas as pl
from jax.experimental.pallas import tpu as pltpu


def _round_up(v: int, m: int) -> int:
    return (v + m - 1) // m * m


def _device_caps():
    """Return (physical VMEM bytes per TensorCore, # TensorCores fed by the grid)."""
    try:
        kind = jax.devices()[0].device_kind.lower()
    except Exception:
        kind = ""
    if "v2" in kind or "v3" in kind:
        return 16 << 20, 1
    if "7" in kind:                       # v7x: 64 MiB VMEM/TC, 2 TCs per chip
        return 64 << 20, 2
    if "v4" in kind or "v5p" in kind:     # megacore: 2 TCs, 128 MiB
        return 128 << 20, 2
    return 128 << 20, 1                   # v5e / v6e: 1 TC, 128 MiB


def _plan(B, dim, n_pad, x_isz, w_isz, o_isz, tm_override=None, tk_override=None):
    """Pick (tm, tk, vmem_limit_bytes) from a generation-aware VMEM budget."""
    vmem_phys, num_tc = _device_caps()
    budget = int(vmem_phys * 0.6)

    if tm_override is not None:
        tm = _round_up(min(tm_override, _round_up(B, 8)), 8)
    else:
        tm_cap = 512 if vmem_phys <= (64 << 20) else 1024
        tm = min(tm_cap, _round_up(B, 8))
        if num_tc >= 2 and B > 8:
            # Guarantee >= 2 batch tiles so the "parallel" axis feeds both TCs.
            tm = min(tm, _round_up(pl.cdiv(B, 2), 8))

    def need(tm_, tk_, with_acc):
        d_pad_ = pl.cdiv(dim, tk_) * tk_
        return (2 * tm_ * tk_ * x_isz                     # x tile (double-buffered)
                + 2 * d_pad_ * n_pad * w_isz              # resident W (2x for safety)
                + 2 * tm_ * n_pad * o_isz                 # out tile (double-buffered)
                + (tm_ * n_pad * 4 if with_acc else 0)    # f32 accumulator
                + n_pad * 4)                              # bias

    if tk_override is not None:
        tk = min(tk_override, dim)        # must be a multiple of 128 if < dim
    else:
        # Prefer a single K block; shrink tm (down to 256) before splitting K.
        while tm > 256 and need(tm, dim, False) > budget:
            tm = _round_up(max(tm // 2, 8), 8)
        if dim <= 1024 or need(tm, dim, False) <= budget:
            tk = dim
        else:
            tk = 1024                     # big K chunks amortize DMA/MXU startup
            while tk * 2 < dim and need(tm, tk * 2, True) <= budget:
                tk *= 2

    vmem_limit = min(int(vmem_phys * 0.85),
                     need(tm, tk, tk != dim) + (16 << 20))
    return tm, tk, vmem_limit


# ---------------------------------------------------------------------------
# Kernels
# ---------------------------------------------------------------------------
def _linear_kernel_fused(x_ref, w_ref, b_ref, o_ref):
    # Single-K fast path: no accumulator scratch, no reduction loop.
    #   x_ref : (tm, dim)    native activation dtype (cast in-kernel)
    #   w_ref : (dim, n_pad) compute dtype, VMEM-resident across the grid
    #   b_ref : (1, n_pad)   f32
    #   o_ref : (tm, n_pad)
    xb = x_ref[...].astype(w_ref.dtype)
    acc = jnp.dot(xb, w_ref[...], preferred_element_type=jnp.float32)
    o_ref[...] = (acc + b_ref[...]).astype(o_ref.dtype)


def _linear_kernel_ksplit(x_ref, w_ref, b_ref, o_ref, acc_ref, *, tk):
    # K-tiled reduction path for very large `dim`.  The (pre-transposed,
    # K-padded) weight stays fully VMEM-resident (index_map == (0, 0)); the
    # current K chunk is sliced out in-kernel so W is never re-streamed.
    k = pl.program_id(1)

    @pl.when(k == 0)
    def _init():
        acc_ref[...] = jnp.zeros_like(acc_ref)

    start = pl.multiple_of(k * tk, tk)
    xb = x_ref[...].astype(w_ref.dtype)
    acc_ref[...] += jnp.dot(xb, w_ref[pl.ds(start, tk), :],
                            preferred_element_type=jnp.float32)

    @pl.when(k == pl.num_programs(1) - 1)
    def _finalize():
        o_ref[...] = (acc_ref[...] + b_ref[...]).astype(o_ref.dtype)


# ---------------------------------------------------------------------------
# Wrappers
# ---------------------------------------------------------------------------
def prepare_classifier_params(weight, bias, compute_dtype=jnp.bfloat16):
    """One-time weight/bias preprocessing -- call once, reuse across forwards.

    weight: (n_way, dim) in native PyTorch nn.Linear layout; bias: (n_way,).
    Returns (w_prep, b_prep): W cast to `compute_dtype`, transposed to the
    MXU-natural [K, N] layout and zero-padded to a lane-dense N (multiple of
    128); bias cast to f32 with matching padding, shaped (1, n_pad).
    """
    n_way, dim = weight.shape
    n_pad = _round_up(max(n_way, 128), 128)
    w = jnp.asarray(weight).astype(compute_dtype).T          # (dim, n_way)
    b = jnp.asarray(bias).astype(jnp.float32)
    if n_pad != n_way:
        w = jnp.pad(w, ((0, 0), (0, n_pad - n_way)))
        b = jnp.pad(b, (0, n_pad - n_way))
    return w, b.reshape(1, n_pad)


@functools.partial(jax.jit, static_argnames=("n_way", "tm_override", "tk_override"))
def classifier_forward(x, w_prep, b_prep, *, n_way, tm_override=None,
                       tk_override=None):
    """y = x @ W^T + b for the prepared (transposed / N-padded) parameters."""
    B, dim = x.shape
    dim_w, n_pad = w_prep.shape
    assert dim_w == dim, "x feature dim must match the prepared weight"
    assert b_prep.shape == (1, n_pad)
    out_dtype = x.dtype

    tm, tk, vmem_limit = _plan(
        B, dim, n_pad,
        jnp.dtype(x.dtype).itemsize,
        jnp.dtype(w_prep.dtype).itemsize,
        jnp.dtype(out_dtype).itemsize,
        tm_override, tk_override)

    grid_i = pl.cdiv(B, tm)   # no batch padding: M edge-block rows are masked off

    if tk == dim:
        # ---- single-K fast path: W fully resident, direct store -----------
        out = pl.pallas_call(
            _linear_kernel_fused,
            out_shape=jax.ShapeDtypeStruct((B, n_pad), out_dtype),
            grid=(grid_i,),
            in_specs=[
                pl.BlockSpec((tm, dim), lambda i: (i, 0)),      # x tile
                pl.BlockSpec((dim, n_pad), lambda i: (0, 0)),   # W (resident)
                pl.BlockSpec((1, n_pad), lambda i: (0, 0)),     # bias (resident)
            ],
            out_specs=pl.BlockSpec((tm, n_pad), lambda i: (i, 0)),
            compiler_params=pltpu.CompilerParams(
                dimension_semantics=("parallel",),
                vmem_limit_bytes=vmem_limit,
            ),
        )(x, w_prep, b_prep)
    else:
        # ---- very large dim: K-tiled reduction -----------------------------
        # K is zero-padded explicitly (garbage in the reduction would corrupt
        # real outputs); M edge blocks stay implicit.
        n_k = pl.cdiv(dim, tk)
        d_pad = n_k * tk
        xk = jnp.pad(x, ((0, 0), (0, d_pad - dim))) if d_pad != dim else x
        wk = (jnp.pad(w_prep, ((0, d_pad - dim), (0, 0)))
              if d_pad != dim else w_prep)
        out = pl.pallas_call(
            functools.partial(_linear_kernel_ksplit, tk=tk),
            out_shape=jax.ShapeDtypeStruct((B, n_pad), out_dtype),
            grid=(grid_i, n_k),
            in_specs=[
                pl.BlockSpec((tm, tk), lambda i, k: (i, k)),        # x K-tile
                pl.BlockSpec((d_pad, n_pad), lambda i, k: (0, 0)),  # W (resident)
                pl.BlockSpec((1, n_pad), lambda i, k: (0, 0)),      # bias
            ],
            out_specs=pl.BlockSpec((tm, n_pad), lambda i, k: (i, 0)),
            scratch_shapes=[pltpu.VMEM((tm, n_pad), jnp.float32)],
            compiler_params=pltpu.CompilerParams(
                dimension_semantics=("parallel", "arbitrary"),
                vmem_limit_bytes=vmem_limit,
            ),
        )(xk, wk, b_prep)

    return out[:, :n_way]


def classifier_forward_torch_layout(x, weight, bias):
    """Un-cached convenience path: accepts the native (n_way, dim) weight.
    For repeated calls, run prepare_classifier_params() once and reuse."""
    w_prep, b_prep = prepare_classifier_params(weight, bias)
    return classifier_forward(x, w_prep, b_prep, n_way=weight.shape[0])


def _reference(x, weight, bias, compute_dtype=jnp.bfloat16):
    # Matches kernel numerics: bf16-quantized inputs, exact f32 accumulation.
    xf = x.astype(compute_dtype).astype(jnp.float32)
    wf = weight.astype(compute_dtype).astype(jnp.float32)
    y = jnp.dot(xf, wf.T, precision=jax.lax.Precision.HIGHEST)
    return (y + bias.astype(jnp.float32)).astype(x.dtype)


if __name__ == "__main__":
    key = jax.random.PRNGKey(0)

    # ---- Test 1: small shapes consistent with the module -------------------
    B, dim, n_way = 4, 32, 8
    kx, kw, kb, key = jax.random.split(key, 4)
    x = jax.random.normal(kx, (B, dim), dtype=jnp.float32)
    weight = jax.random.normal(kw, (n_way, dim), dtype=jnp.float32) * 0.1
    bias = jax.random.normal(kb, (n_way,), dtype=jnp.float32) * 0.1

    w_p, b_p = prepare_classifier_params(weight, bias)   # hoisted, call once
    y = jax.block_until_ready(classifier_forward(x, w_p, b_p, n_way=n_way))
    y_ref = _reference(x, weight, bias)
    assert y.shape == (B, n_way)
    assert jnp.allclose(y, y_ref, atol=5e-3, rtol=5e-3), "small-shape mismatch"

    # ---- Test 2: moderate shapes, multi batch-tile + resident weight -------
    B2, dim2, n_way2 = 300, 2304, 200
    kx2, kw2, kb2, key = jax.random.split(key, 4)
    x2 = jax.random.normal(kx2, (B2, dim2), dtype=jnp.float32)
    w2 = jax.random.normal(kw2, (n_way2, dim2), dtype=jnp.float32) * 0.05
    b2 = jax.random.normal(kb2, (n_way2,), dtype=jnp.float32) * 0.05

    w2_p, b2_p = prepare_classifier_params(w2, b2)
    y2 = jax.block_until_ready(classifier_forward(x2, w2_p, b2_p, n_way=n_way2))
    y2_ref = _reference(x2, w2, b2)
    assert y2.shape == (B2, n_way2)
    assert jnp.allclose(y2, y2_ref, atol=2e-2, rtol=2e-2), "tiled-shape mismatch"

    # ---- Test 3: force the K-split path (accumulator, K pad, M edge block) -
    B3, dim3, n_way3 = 12, 448, 40
    kx3, kw3, kb3, key = jax.random.split(key, 4)
    x3 = jax.random.normal(kx3, (B3, dim3), dtype=jnp.float32)
    w3 = jax.random.normal(kw3, (n_way3, dim3), dtype=jnp.float32) * 0.05
    b3 = jax.random.normal(kb3, (n_way3,), dtype=jnp.float32) * 0.05

    w3_p, b3_p = prepare_classifier_params(w3, b3)
    y3 = jax.block_until_ready(
        classifier_forward(x3, w3_p, b3_p, n_way=n_way3,
                           tm_override=8, tk_override=128))
    y3_ref = _reference(x3, w3, b3)
    assert y3.shape == (B3, n_way3)
    assert jnp.allclose(y3, y3_ref, atol=2e-2, rtol=2e-2), "ksplit mismatch"

    print("KERNEL_OK")
</pallas_src>

<mosaic_0001>
module attributes {stable_mosaic.version = 11 : i64} {
  func.func @_linear_kernel_fused(%arg0: i32, %arg1: memref<8x32xf32, #tpu.memory_space<vmem>>, %arg2: memref<32x128xbf16, #tpu.memory_space<vmem>>, %arg3: memref<1x128xf32, #tpu.memory_space<vmem>>, %arg4: memref<8x128xf32, #tpu.memory_space<vmem>>) attributes {dimension_semantics = [#tpu.dimension_semantics<parallel>], iteration_bounds = array<i64: 1>, scalar_prefetch = 0 : i64, scratch_operands = 0 : i64, tpu.core_type = #tpu.core_type<tc>, window_params = [{transform_indices = @transform_0, window_bounds = array<i64: 8, 32>}, {pipeline_mode = #tpu.pipeline_mode<synchronous>, transform_indices = @transform_1, window_bounds = array<i64: 32, 128>}, {pipeline_mode = #tpu.pipeline_mode<synchronous>, transform_indices = @transform_2, window_bounds = array<i64: 1, 128>}, {transform_indices = @transform_3, window_bounds = array<i64: 8, 128>}]} {
    %c0 = arith.constant 0 : index
    %c0_0 = arith.constant 0 : index
    %0 = vector.load %arg1[%c0, %c0_0] : memref<8x32xf32, #tpu.memory_space<vmem>>, vector<8x32xf32>
    %1 = arith.truncf %0 : vector<8x32xf32> to vector<8x32xbf16>
    %c0_1 = arith.constant 0 : index
    %c0_2 = arith.constant 0 : index
    %2 = vector.load %arg2[%c0_1, %c0_2] : memref<32x128xbf16, #tpu.memory_space<vmem>>, vector<32x128xbf16>
    %cst = arith.constant dense<0.000000e+00> : vector<8x128xf32>
    %3 = tpu.matmul %1, %2, %cst {dimension_numbers = #tpu.dot_dimension_numbers<[1], [0], [0], [1], [0, 0, 1, 1], [], []>} : vector<8x32xbf16>, vector<32x128xbf16>, vector<8x128xf32> -> vector<8x128xf32>
    %c0_3 = arith.constant 0 : index
    %c0_4 = arith.constant 0 : index
    %4 = vector.load %arg3[%c0_3, %c0_4] : memref<1x128xf32, #tpu.memory_space<vmem>>, vector<1x128xf32>
    %5 = vector.broadcast %4 : vector<1x128xf32> to vector<8x128xf32>
    %6 = arith.addf %3, %5 : vector<8x128xf32>
    %c0_5 = arith.constant 0 : index
    %c0_6 = arith.constant 0 : index
    %7 = vector.load %arg4[%c0_5, %c0_6] : memref<8x128xf32, #tpu.memory_space<vmem>>, vector<8x128xf32>
    tpu.vector_store %arg4[%c0_5, %c0_6], %6 {strides = array<i32>} : memref<8x128xf32, #tpu.memory_space<vmem>>, vector<8x128xf32>,
    return
  }
  func.func @transform_0(%arg0: i32) -> (i32, i32) {
    %c0_i32 = arith.constant 0 : i32
    %c0_i32_0 = arith.constant 0 : i32
    return %arg0, %c0_i32 : i32, i32
  }
  func.func @transform_1(%arg0: i32) -> (i32, i32) {
    %c0_i32 = arith.constant 0 : i32
    %c0_i32_0 = arith.constant 0 : i32
    %c0_i32_1 = arith.constant 0 : i32
    return %c0_i32, %c0_i32_0 : i32, i32
  }
  func.func @transform_2(%arg0: i32) -> (i32, i32) {
    %c0_i32 = arith.constant 0 : i32
    %c0_i32_0 = arith.constant 0 : i32
    %c0_i32_1 = arith.constant 0 : i32
    return %c0_i32, %c0_i32_0 : i32, i32
  }
  func.func @transform_3(%arg0: i32) -> (i32, i32) {
    %c0_i32 = arith.constant 0 : i32
    %c0_i32_0 = arith.constant 0 : i32
    return %arg0, %c0_i32 : i32, i32
  }
}

</mosaic_0001>

<bundles_post_ra>
// kernel: classifier_forward.1
= control target key start
LH: loop header
LB: loop body
LE: loop exit
PB: predicated region body
PF: predicated region fallthrough
CT: control target
= control target key end

     0   :  { %8 = vsyncpa [#allocation3], 0  ;;  %s249_s0 = inlined_call_operand.hbm [shape: f32[4,32], index: 0, kind: input, shape index: {}]   ;;  %s250_s1 = inlined_call_operand.hbm [shape: bf16[32,128], index: 1, kind: input, shape index: {}]   ;;  %s251_s2 = inlined_call_operand.vmem [shape: f32[1,128], index: 2, kind: input, shape index: {}]   ;;  %s252_s3 = inlined_call_operand.hbm [shape: f32[4,128], index: 3, kind: output, shape index: {}]  }
   0x1   :  { %9 = vsyncpa [#allocation6], 0 }
   0x2   :  { %10 = vsyncpa [#allocation4], 0 }
   0x3   :  { %14 = vsyncadd [#allocation3], 64  ;;  %s15_s14 = sshll.u32 %s249_s0, 4  ;;  %s203_s15 = smov [#allocation2]   ;;  %s16_s14 = int_to_ptr.hbm [resolvable:$true] %s15_s14 }
   0x4   :  { %s17_s16 = sshll.u32 %s203_s15, 4  ;;  %s28_s19 = sshll.u32 %s250_s1, 4  ;;  %s18_s16 = int_to_ptr.vmem [resolvable:$true] %s17_s16  ;;  %s29_s19 = int_to_ptr.hbm [resolvable:$true] %s28_s19 }
   0x5   :  { %s204_s20 = smov 64   ;;  %s205_s21 = smov 4  }
   0x6   :  { %23 = dma.hbm_to_vmem [thread:$0]  %s16_s14, 64, %s18_s16, [#allocation3], %s204_s20, %s204_s20, %s205_s21  }
   0x7   :  { %s206_s22 = smov [#allocation5]  }
   0x8   :  { %s30_s23 = sshll.u32 %s206_s22, 4  ;;  %s31_s23 = int_to_ptr.vmem [resolvable:$true] %s30_s23 }
   0x9   :  { %36 = dma.hbm_to_vmem [thread:$0]  %s29_s19, 256, %s31_s23, [#allocation6], %s204_s20, %s204_s20, %s205_s21  }
   0xa   :  { %197 = dma.done.wait [#allocation3], 128  }
   0xb   :  { %198 = vsyncadd [#allocation3], 4294967168 }
   0xc   :  { %199 = dma.done.wait [#allocation6], 256  }
   0xd   :  { %200 = vsyncadd [#allocation6], 4294967040  ;;  %v118_v0 = vld [vmem:[#allocation5 + $0x8] sm:$0xff]  ;;  %v117_v1 = vld [vmem:[#allocation5] sm:$0xff]  ;;  %vm70_vm0 = vcmask 261120  }
   0xe   :  { %80 = vmatpush.bf16.msra.mxu0 %v118_v0  ;;  %v48_v2 = vld [vmem:[#allocation2] sm:$0xff] }
   0xf   :  { %v49_v3 = vpack.c.bf16 %v48_v2, %v48_v2  ;;  %v124_v4 = vld [vmem:[%s251_s2] ss:$0 sm:$0xff] }
  0x12   :  { %81 = vmatpush.bf16.msra.mxu0 %v117_v1 }
  0x15   :  { %116 = vmatmul.msk.bf16.vlgmr.msra.gmra.mxu0 %vm70_vm0, %v49_v3 }
  0x92   :  { %v83_v5 = vpop.f32.mrf.mxu0 }
  0x93   :  { %v84_v6 = vadd.f32 %v124_v4, %v83_v5 }
  0x95   :  { %87 = vst [vmem:[#allocation7] sm:$0xff] %v84_v6 }
  0x9a   :  { %v85_v7 = vpop.f32.mrf.mxu0 }
  0x9b   :  { %91 = vsyncadd [#allocation4], 64  ;;  %s94_s26 = sshll.u32 %s252_s3, 4  ;;  %s207_s27 = smov [#allocation7]   ;;  %s95_s26 = int_to_ptr.hbm [resolvable:$true] %s94_s26 }
  0x9c   :  { %s92_s28 = sshll.u32 %s207_s27, 4  ;;  %s93_s28 = int_to_ptr.vmem [resolvable:$true] %s92_s28 }
  0x9d   :  { %100 = dma.vmem_to_hbm [thread:$0]  %s93_s28, 64, %s95_s26, [#allocation4], %s204_s20, %s204_s20, %s205_s21  }
  0x9e   :  { %201 = dma.done.wait [#allocation4], 128  }
  0x9f   :  { %202 = vsyncadd [#allocation4], 4294967168 }
  0xa0   :  { %105 = vsyncpa [#allocation3], 1 }
  0xa1   :  { %106 = vsyncpa [#allocation6], 1 }
  0xa2   :  { %107 = vsyncpa [#allocation4], 1 }

</bundles_post_ra>
